<compile_context>
chip_gen: v5e
topology: v5e:2x2
jax: 0.10.0
libtpu: 0.0.40
codegen_flags: <defaults>
</compile_context>

<pallas_src>
import functools

import jax
import jax.numpy as jnp
from jax.experimental import pallas as pl
from jax.experimental.pallas import tpu as pltpu


# ----------------------- context helpers (match the PyTorch module) ----------

def check_valid_context(context):
    assert context[0] <= context[-1], "Invalid context"


def normalize_context(context, full_context=False):
    check_valid_context(context)
    if full_context:
        context = list(range(context[0], context[-1] + 1))
    return list(context)


def get_valid_steps(context, seq_len):
    start = 0 if context[0] >= 0 else -context[0]
    end = seq_len if context[-1] <= 0 else seq_len - context[-1]
    return start, end


def _pick_time_tile(tt, t_out, tt_max):
    """Time tile: multiple of 8 sublanes unless a single tile covers T_out."""
    if tt is None:
        tt = t_out if t_out <= tt_max else tt_max
    tt = min(tt, t_out)
    if tt < t_out and tt % 8 != 0:
        tt = max(8, (tt // 8) * 8)
    nt = pl.cdiv(t_out, tt)
    return tt, nt, nt * tt


# ----------------------------- Splice kernel ---------------------------------

def _splice_kernel(x_ref, o_ref, *, context, start, tt, bb):
    # x_ref: (bb, T_pad, D) -- resident across the time-tile grid axis
    # o_ref: (bb, tt, C*D)
    t = pl.program_id(1)
    base = t * tt
    if tt % 8 == 0:
        base = pl.multiple_of(base, 8)          # sublane-aligned tile origin
    for i in range(bb):                          # small static unrolled loop
        parts = [x_ref[i, pl.ds(base + (start + off), tt), :] for off in context]
        # Concatenate in registers -> one full-width store per batch row.
        o_ref[i, :, :] = jnp.concatenate(parts, axis=-1)


def splice_forward(x, context, full_context=False, *, bb=1, tt=None,
                   tt_max=512, vmem_limit_bytes=32 * 1024 * 1024):
    """Pallas implementation of Splice.forward (batch_first=True, keep_dims=False)."""
    assert x.ndim == 3, "Input should be a 3D tensor"
    B, T, D = x.shape
    ctx = normalize_context(context, full_context)
    C = len(ctx)
    start, end = get_valid_steps(ctx, T)
    t_out = end - start
    assert t_out > 0, "context does not fit in the sequence"

    tt, nt, t_out_pad = _pick_time_tile(tt, t_out, tt_max)

    bb = max(1, min(bb, B))
    nb = pl.cdiv(B, bb)
    b_pad = nb * bb

    # Pad the time axis so every (tile, offset) window stays in bounds, and pad
    # the batch axis up to a multiple of the batch block.  Padded rows are
    # sliced off the result below.
    right = max(ctx[-1], 0)
    T_pad = start + t_out_pad + right            # == T + (t_out_pad - t_out)
    if (T_pad != T) or (b_pad != B):
        x = jnp.pad(x, ((0, b_pad - B), (0, T_pad - T), (0, 0)))

    kernel = functools.partial(_splice_kernel, context=ctx, start=start,
                               tt=tt, bb=bb)
    out = pl.pallas_call(
        kernel,
        out_shape=jax.ShapeDtypeStruct((b_pad, t_out_pad, C * D), x.dtype),
        grid_spec=pltpu.PrefetchScalarGridSpec(
            num_scalar_prefetch=0,
            grid=(nb, nt),
            in_specs=[
                # x block is constant along the time-tile axis -> DMA'd once
                # per batch block and kept in VMEM across all time tiles.
                pl.BlockSpec((bb, T_pad, D), lambda b, t: (b, 0, 0)),
            ],
            out_specs=pl.BlockSpec((bb, tt, C * D), lambda b, t: (b, t, 0)),
        ),
        compiler_params=pltpu.CompilerParams(
            dimension_semantics=("parallel", "parallel"),
            vmem_limit_bytes=vmem_limit_bytes),
    )(x)
    return out[:B, :t_out, :]


def splice_reference(x, context, full_context=False):
    """Pure-JAX reference matching the PyTorch Splice module."""
    ctx = normalize_context(context, full_context)
    B, T, D = x.shape
    start, end = get_valid_steps(ctx, T)
    return jnp.concatenate([x[:, start + o:end + o, :] for o in ctx], axis=-1)


# --------- Optional: Splice fused with SequenceWise(Linear) + ReLU -----------
# Demonstrates the reviewer-suggested single K=C*D MXU contraction (spliced
# tile built once per time tile), bf16 MXU inputs with f32 accumulation, and a
# 128-lane-padded (lane-dense) output store.  Weight layout: w[c*D + d, o].

def _splice_linear_relu_kernel(x_ref, w_ref, b_ref, o_ref, *, context, start, tt):
    # x_ref: (T_pad, D) bf16   w_ref: (C*D, O_pad) bf16
    # b_ref: (1, O_pad) f32    o_ref: (tt, O_pad) f32
    t = pl.program_id(1)
    base = t * tt
    if tt % 8 == 0:
        base = pl.multiple_of(base, 8)
    parts = [x_ref[pl.ds(base + (start + off), tt), :] for off in context]
    spliced = jnp.concatenate(parts, axis=-1)                    # (tt, C*D)
    acc = jnp.dot(spliced, w_ref[...], preferred_element_type=jnp.float32)
    acc = acc + b_ref[...]
    o_ref[...] = jnp.maximum(acc, 0.0).astype(o_ref.dtype)


def splice_linear_relu_forward(x, w, b, context, full_context=False, *,
                               tt=None, tt_max=512,
                               vmem_limit_bytes=32 * 1024 * 1024):
    B, T, D = x.shape
    ctx = normalize_context(context, full_context)
    C = len(ctx)
    assert w.shape[0] == C * D
    O = w.shape[1]
    start, end = get_valid_steps(ctx, T)
    t_out = end - start
    assert t_out > 0

    tt, nt, t_out_pad = _pick_time_tile(tt, t_out, tt_max)

    right = max(ctx[-1], 0)
    T_pad = start + t_out_pad + right
    x_p = x if T_pad == T else jnp.pad(x, ((0, 0), (0, T_pad - T), (0, 0)))

    # Lane-dense output: zero-pad the output columns to a multiple of 128.
    O_pad = ((O + 127) // 128) * 128
    w_p = w if O_pad == O else jnp.pad(w, ((0, 0), (0, O_pad - O)))
    b_p = b if O_pad == O else jnp.pad(b, (0, O_pad - O))

    x_bf = x_p.astype(jnp.bfloat16)              # bf16 MXU inputs
    w_bf = w_p.astype(jnp.bfloat16)
    b_f32 = b_p.reshape(1, O_pad).astype(jnp.float32)

    kernel = functools.partial(_splice_linear_relu_kernel,
                               context=ctx, start=start, tt=tt)
    out = pl.pallas_call(
        kernel,
        out_shape=jax.ShapeDtypeStruct((B, t_out_pad, O_pad), jnp.float32),
        grid_spec=pltpu.PrefetchScalarGridSpec(
            num_scalar_prefetch=0,
            grid=(B, nt),
            in_specs=[
                pl.BlockSpec((None, T_pad, D), lambda bi, t: (bi, 0, 0)),
                pl.BlockSpec((C * D, O_pad), lambda bi, t: (0, 0)),
                pl.BlockSpec((1, O_pad), lambda bi, t: (0, 0)),
            ],
            out_specs=pl.BlockSpec((None, tt, O_pad), lambda bi, t: (bi, t, 0)),
        ),
        compiler_params=pltpu.CompilerParams(
            dimension_semantics=("parallel", "parallel"),
            vmem_limit_bytes=vmem_limit_bytes),
    )(x_bf, w_bf, b_f32)
    return out[:, :t_out, :O]


def splice_linear_relu_reference(x, w, b, context, full_context=False):
    sp = splice_reference(x, context, full_context)
    return jax.nn.relu(sp @ w + b)


# ------------------------------------ test -----------------------------------

if __name__ == "__main__":
    # Shapes consistent with the module: x (batch=2, seq=16, input_dim=32),
    # context=[-2, 0, 2] -> output (2, 12, 96).
    B, T, D, O = 2, 16, 32, 32
    context = [-2, 0, 2]
    ctx = normalize_context(context)
    C = len(ctx)

    key = jax.random.PRNGKey(0)
    kx, kw, kb = jax.random.split(key, 3)
    x = jax.random.normal(kx, (B, T, D), dtype=jnp.float32)

    # ---- Splice (the module's forward). Small tt/bb exercise the tiled path.
    y = splice_forward(x, context, bb=2, tt=8)
    y = jax.block_until_ready(y)
    y_ref = splice_reference(x, context)
    assert y.shape == (B, T - 4, C * D), y.shape
    assert jnp.array_equal(y, y_ref), float(jnp.max(jnp.abs(y - y_ref)))

    # ---- Optional fused Splice + Linear + ReLU (TDNN block) demo.
    fan_in = C * D
    bound = 1.0 / (fan_in ** 0.5)
    w = jax.random.uniform(kw, (C * D, O), jnp.float32, -bound, bound)
    b = jax.random.uniform(kb, (O,), jnp.float32, -bound, bound)
    z = splice_linear_relu_forward(x, w, b, context, tt=8)
    z = jax.block_until_ready(z)
    z_ref = splice_linear_relu_reference(x, w, b, context)
    assert z.shape == (B, T - 4, O), z.shape
    # bf16 MXU inputs with f32 accumulation -> loosened tolerance.
    assert jnp.allclose(z, z_ref, rtol=3e-2, atol=3e-2), \
        float(jnp.max(jnp.abs(z - z_ref)))

    print("KERNEL_OK")
</pallas_src>

<mosaic_0001>
module attributes {stable_mosaic.version = 11 : i64} {
  func.func @_splice_kernel(%arg0: i32, %arg1: i32, %arg2: memref<2x20x32xf32, #tpu.memory_space<vmem>>, %arg3: memref<2x8x96xf32, #tpu.memory_space<vmem>>) attributes {dimension_semantics = [#tpu.dimension_semantics<parallel>, #tpu.dimension_semantics<parallel>], iteration_bounds = array<i64: 1, 2>, scalar_prefetch = 0 : i64, scratch_operands = 0 : i64, tpu.core_type = #tpu.core_type<tc>, window_params = [{transform_indices = @transform_0, window_bounds = array<i64: 2, 20, 32>}, {transform_indices = @transform_1, window_bounds = array<i64: 2, 8, 96>}]} {
    %c8_i32 = arith.constant 8 : i32
    %0 = arith.muli %arg1, %c8_i32 : i32
    %1 = tpu.assume_multiple %0, 8 : i32
    %c0_i32 = arith.constant 0 : i32
    %2 = arith.addi %1, %c0_i32 : i32
    %c0 = arith.constant 0 : index
    %3 = arith.index_cast %2 : i32 to index
    %c0_0 = arith.constant 0 : index
    %4 = vector.load %arg2[%c0, %3, %c0_0] : memref<2x20x32xf32, #tpu.memory_space<vmem>>, vector<1x8x32xf32>
    %5 = vector.shape_cast %4 : vector<1x8x32xf32> to vector<8x32xf32>
    %c2_i32 = arith.constant 2 : i32
    %6 = arith.addi %1, %c2_i32 : i32
    %c0_1 = arith.constant 0 : index
    %7 = arith.index_cast %6 : i32 to index
    %c0_2 = arith.constant 0 : index
    %8 = vector.load %arg2[%c0_1, %7, %c0_2] : memref<2x20x32xf32, #tpu.memory_space<vmem>>, vector<1x8x32xf32>
    %9 = vector.shape_cast %8 : vector<1x8x32xf32> to vector<8x32xf32>
    %c4_i32 = arith.constant 4 : i32
    %10 = arith.addi %1, %c4_i32 : i32
    %c0_3 = arith.constant 0 : index
    %11 = arith.index_cast %10 : i32 to index
    %c0_4 = arith.constant 0 : index
    %12 = vector.load %arg2[%c0_3, %11, %c0_4] : memref<2x20x32xf32, #tpu.memory_space<vmem>>, vector<1x8x32xf32>
    %13 = vector.shape_cast %12 : vector<1x8x32xf32> to vector<8x32xf32>
    %14 = tpu.concatenate %5, %9, %13 in 1 : vector<8x32xf32>, vector<8x32xf32>, vector<8x32xf32> -> vector<8x96xf32>
    %c0_5 = arith.constant 0 : index
    %c0_6 = arith.constant 0 : index
    %c0_7 = arith.constant 0 : index
    %15 = vector.load %arg3[%c0_5, %c0_6, %c0_7] : memref<2x8x96xf32, #tpu.memory_space<vmem>>, vector<1x8x96xf32>
    %16 = vector.shape_cast %15 : vector<1x8x96xf32> to vector<8x96xf32>
    %17 = vector.shape_cast %14 : vector<8x96xf32> to vector<1x8x96xf32>
    tpu.vector_store %arg3[%c0_5, %c0_6, %c0_7], %17 {strides = array<i32>} : memref<2x8x96xf32, #tpu.memory_space<vmem>>, vector<1x8x96xf32>,
    %c0_i32_8 = arith.constant 0 : i32
    %18 = arith.addi %1, %c0_i32_8 : i32
    %c1 = arith.constant 1 : index
    %19 = arith.index_cast %18 : i32 to index
    %c0_9 = arith.constant 0 : index
    %20 = vector.load %arg2[%c1, %19, %c0_9] : memref<2x20x32xf32, #tpu.memory_space<vmem>>, vector<1x8x32xf32>
    %21 = vector.shape_cast %20 : vector<1x8x32xf32> to vector<8x32xf32>
    %c2_i32_10 = arith.constant 2 : i32
    %22 = arith.addi %1, %c2_i32_10 : i32
    %c1_11 = arith.constant 1 : index
    %23 = arith.index_cast %22 : i32 to index
    %c0_12 = arith.constant 0 : index
    %24 = vector.load %arg2[%c1_11, %23, %c0_12] : memref<2x20x32xf32, #tpu.memory_space<vmem>>, vector<1x8x32xf32>
    %25 = vector.shape_cast %24 : vector<1x8x32xf32> to vector<8x32xf32>
    %c4_i32_13 = arith.constant 4 : i32
    %26 = arith.addi %1, %c4_i32_13 : i32
    %c1_14 = arith.constant 1 : index
    %27 = arith.index_cast %26 : i32 to index
    %c0_15 = arith.constant 0 : index
    %28 = vector.load %arg2[%c1_14, %27, %c0_15] : memref<2x20x32xf32, #tpu.memory_space<vmem>>, vector<1x8x32xf32>
    %29 = vector.shape_cast %28 : vector<1x8x32xf32> to vector<8x32xf32>
    %30 = tpu.concatenate %21, %25, %29 in 1 : vector<8x32xf32>, vector<8x32xf32>, vector<8x32xf32> -> vector<8x96xf32>
    %c1_16 = arith.constant 1 : index
    %c0_17 = arith.constant 0 : index
    %c0_18 = arith.constant 0 : index
    %31 = vector.load %arg3[%c1_16, %c0_17, %c0_18] : memref<2x8x96xf32, #tpu.memory_space<vmem>>, vector<1x8x96xf32>
    %32 = vector.shape_cast %31 : vector<1x8x96xf32> to vector<8x96xf32>
    %33 = vector.shape_cast %30 : vector<8x96xf32> to vector<1x8x96xf32>
    tpu.vector_store %arg3[%c1_16, %c0_17, %c0_18], %33 {strides = array<i32>} : memref<2x8x96xf32, #tpu.memory_space<vmem>>, vector<1x8x96xf32>,
    return
  }
  func.func @transform_0(%arg0: i32, %arg1: i32) -> (i32, i32, i32) {
    %c0_i32 = arith.constant 0 : i32
    %c0_i32_0 = arith.constant 0 : i32
    %c0_i32_1 = arith.constant 0 : i32
    return %arg0, %c0_i32, %c0_i32_0 : i32, i32, i32
  }
  func.func @transform_1(%arg0: i32, %arg1: i32) -> (i32, i32, i32) {
    %c0_i32 = arith.constant 0 : i32
    %c0_i32_0 = arith.constant 0 : i32
    return %arg0, %arg1, %c0_i32 : i32, i32, i32
  }
}

</mosaic_0001>

<bundles_post_ra>
// kernel: tpu_custom_call.1
= control target key start
LH: loop header
LB: loop body
LE: loop exit
PB: predicated region body
PF: predicated region fallthrough
CT: control target
= control target key end

     0   :  { %6 = vsyncpa [#allocation3], 0  ;;  %s567_s0 = inlined_call_operand.vmem [shape: f32[2,20,32], index: 0, kind: input, shape index: {}]   ;;  %s568_s1 = inlined_call_operand.hbm [shape: f32[2,16,96], index: 1, kind: output, shape index: {}]  }
   0x1   :  { %8 = vsyncpa [#allocation3 + $0x1], 0  ;;  %s466_s6 = smov 0   ;;  %s468_s7 = smov 0  }
   0x2   :  { %s470_s8 = smov 0   ;;  %s472_s9 = smov 0  }
   0x3   :  { %s474_s10 = smov 0   ;;  %s476_s11 = smov 0  }
   0x4 LB: > { %s289_s12 = sadd.s32 4294967295, %s449_s11   ;;  %s290_s13 = sadd.s32 4294967294, %s449_s11   ;;  %s449_s11 = sphi %s476_s11, %s14_s11   ;;  %s445_s10 = sphi %s474_s10, %s575_s10   ;;  %s441_s9 = sphi %s472_s9, %s574_s9   ;;  %s437_s8 = sphi %s470_s8, %s573_s8   ;;  %s433_s7 = sphi %s468_s7, %s572_s7   ;;  %s429_s6 = sphi %s466_s6, %s571_s6  }
   0x5   : > { %s23_s14 = sadd.s32 1, %s445_s10  ;;  %s61_s15 = sadd.s32 1, %s437_s8 }
   0x6   : > { %p24_p0 = scmp.ge.s32.totalorder %s23_s14, 2  ;;  %p71_p1 = scmp.ne.s32.totalorder %s437_s8, %s433_s7 }
   0x7   : > { %p72_p2 = scmp.eq.s32.totalorder %s289_s12, 1  ;;  %p77_p3 = scmp.ne.s32.totalorder %s433_s7, %s429_s6 }
   0x8   : > { %s577_s14 = smov (%p24_p0, %s23_s14), 0  ;;  %p78_p5 = scmp.eq.s32.totalorder %s290_s13, 1 }
   0x9   : > { %p506_p4 = por %p72_p2, %p71_p1  ;;  %s57_s17 = ssub.s32 %s445_s10, %s577_s14 }
   0xa   : > { %p293_p6 = scmp.ge.s32.totalorder %s449_s11, 1  ;;  %p59_p7 = scmp.eq.s32.totalorder %s57_s17, 0 }
   0xb   : > { %p513_p8 = por %p78_p5, %p77_p3  ;;  %p106_p9 = scmp.lt.s32.totalorder %s449_s11, 3 }
   0xc   : > { %s519_s19 = scalar_select %p59_p7, %s437_s8, %s61_s15  }
   0xd   : > { %p107_p10 = pnand %p293_p6, %p106_p9 }
   0xe   : > { %s295_s20 = sshll.u32 (!%p107_p10), %s441_s9, 3  ;;  %s451_s24 = smov (!%p107_p10), 32  }
   0xf   : > { %110 = sbr.rel (%p107_p10) target bundleno = 151 (0x97), region = 24  ;;  %s136_s23 = scalar_lea.vmem (!%p107_p10), %s567_s0, %s295_s20 }
  0x10   : > { %s452_s25 = smov (!%p107_p10), 64   ;;  %s124_s26 = sand.u32 (!%p107_p10), 1, %s433_s7  }
  0x11   : > { %s294_s27 = sshll.u32 (!%p107_p10), %s124_s26, 4  ;;  %s193_s30 = scalar_lea.hbm (!%p107_p10), %s568_s1, %s295_s20 }
  0x12   : > { %s126_s2 = scalar_lea.vmem (!%p107_p10), [#allocation2], %s294_s27  ;;  %s196_s3 = sshll.u32 (!%p107_p10), %s193_s30, 4  ;;  %s197_s3 = int_to_ptr.hbm [resolvable:$true] %s196_s3 }
  0x13   : > { %s194_s4 = sshll.u32 (!%p107_p10), %s126_s2, 4  ;;  %s180_s5 = scalar_lea.sflag (!%p107_p10), [#allocation3], %s124_s26  ;;  %s195_s4 = int_to_ptr.vmem [resolvable:$true] %s194_s4 }
  0x14   : > { %v297_v0 = vld [vmem:[%s136_s23 + $0x2] sm:$0xff]  ;;  %v303_v2 = vld [vmem:[%s136_s23 + $0x1a] sm:$0xff]  ;;  %vm152_vm0 = vcmask 261120   ;;  %vm154_vm1 = vcmask 523264   ;;  %vm156_vm2 = vcmask 785408   ;;  %s385_s9 = sshra.s32 %s197_s3, 4  ;;  %s386_s9 = int_to_ptr.hbm [resolvable:$true] %s385_s9 }
  0x15   : > { %v299_v1 = vld [vmem:[%s136_s23 + $0x4] sm:$0xff]  ;;  %145 = vrot.lane.b32.xlu0 %v297_v0, %s451_s24  ;;  %v305_v3 = vld [vmem:[%s136_s23 + $0x1c] sm:$0xff]  ;;  %s387_s12 = scalar_lea.hbm %s386_s9, 16  ;;  %s391_s17 = scalar_lea.hbm %s568_s1, 32 }
  0x16   : > { %149 = vrot.lane.b32.xlu1 %v299_v1, %s452_s25  ;;  %v137_v4 = vld [vmem:[%s136_s23] sm:$0xff]  ;;  %v301_v9 = vld [vmem:[%s136_s23 + $0x18] sm:$0xff]  ;;  %p388_p11 = scmp.ne.s32.totalorder %s386_s9, %s387_s12  ;;  %p392_p0 = scmp.lt.s32.totalorder %s386_s9, %s568_s1 }
  0x17   : > { %p393_p1 = scmp.lt.s32.totalorder %s391_s17, %s387_s12 }
  0x18   : > { %p389_p12 = pnand %p388_p11, %p506_p4 }
  0x19   : > { %p394_p2 = por %p393_p1, %p392_p0 }
  0x1a   : > { %p390_p13 = pneg %p389_p12 }
  0x1c   : > { %p395_p3 = pnand %p394_p2, %p390_p13 }
  0x1d   : > { %168 = vrot.lane.b32.xlu0 %v303_v2, %s451_s24 }
  0x1e   : > { %172 = vrot.lane.b32.xlu1 %v305_v3, %s452_s25 }
  0x87   : > { %v146_v5 = vpop.permute.xlu0 %145 }
  0x88   : > { %v150_v6 = vpop.permute.xlu1 %149  ;;  %v153_v7 = vsel %vm152_vm0, %v137_v4, %v146_v5 }
  0x89   : > { %v155_v8 = vsel %vm154_vm1, %v153_v7, %v150_v6 }
  0x8a   : > { %157 = vst.msk [vmem:[%s126_s2] sm:$0xff] %vm156_vm2, %v155_v8 }
  0x8f   : > { %v169_v10 = vpop.permute.xlu0 %168 }
  0x90   : > { %v173_v11 = vpop.permute.xlu1 %172  ;;  %v175_v12 = vsel %vm152_vm0, %v301_v9, %v169_v10 }
  0x91   : > { %v176_v13 = vsel %vm154_vm1, %v175_v12, %v173_v11 }
  0x92   : > { %306 = vst.msk [vmem:[%s126_s2 + $0x8] sm:$0xff] %vm156_vm2, %v176_v13 }
  0x93   : > { %398 = shalt.err (!%p395_p3)
}
  0x94   : > { %s453_s22 = smov 128   ;;  %s454_s23 = smov 256  }
  0x95   : > { %s455_s24 = smov 8  }
  0x96   : > { %311 = dma.vmem_to_hbm [thread:$0]  (%p506_p4), %s195_s4, 256, %s197_s3, %s180_s5, %s453_s22, %s454_s23, %s455_s24  }
  0x97 PF: > { %p317_p5 = scmp.ge.s32.totalorder %s449_s11, 2  ;;  %s211_s25 = sand.u32 1, %s429_s6  }
  0x98   : > { %s212_s26 = scalar_lea.sflag [#allocation3], %s211_s25 }
  0x99   : > { %p314_p6 = pnand %p317_p5, %p513_p8 }
  0x9b   : > { %p315_p7 = pneg %p314_p6 }
  0x9d   : > { %424 = dma.done.wait (%p315_p7), %s212_s26, 256  }
  0x9e   : > { %426 = vsyncadd (%p315_p7), %s212_s26, 4294967040  ;;  %s14_s11 = sadd.s32 1, %s449_s11   ;;  %s571_s6 = smov %s433_s7 }
  0x9f   : > { %p11_p9 = scmp.ge.s32.totalorder %s14_s11, 4   ;;  %s572_s7 = smov %s437_s8 }
  0xa0   : > { %s573_s8 = smov %s519_s19  ;;  %s574_s9 = smov %s445_s10 }
  0xa1   : > { %s575_s10 = smov %s577_s14  ;;  %13 = sbr.rel (!%p11_p9) target bundleno = 4 (0x4), region = 66 }
  0xa6   :  { %218 = vsyncpa [#allocation3], 1 }
  0xa7   :  { %220 = vsyncpa [#allocation3 + $0x1], 1 }

</bundles_post_ra>
